<compile_context>
chip_gen: v5e
topology: v5e:2x2
jax: 0.10.0
libtpu: 0.0.40
codegen_flags: <defaults>
</compile_context>

<pallas_src>
import functools

import jax
import jax.numpy as jnp
from jax import lax
from jax.experimental import pallas as pl
from jax.experimental.pallas import tpu as pltpu

BLOCK_SIZE = 8          # max sequence length (causal mask size)
EMBEDDING_DIM = 64      # C
HEAD_SIZE = 16          # head_size
DROPOUT = 0.1           # TODO(synk): dropout is identity here (eval-mode semantics)
LANE = 128              # TPU lane width; head axis padded to this for dense stores


def head_kernel(x_ref, w_ref, o_ref, *, T):
    """Causal single-head attention for one batch element.

    x_ref : (1, T, C)     activations for this batch element
    w_ref : (3, C, LANE)  [q | k | v] projection weights; the C**-0.5 attention
                          scale is pre-folded into the q slot and the head axis
                          is zero-padded to 128 lanes
    o_ref : (1, T, LANE)  lane-dense output (caller slices [..., :head_size])
    """
    x = x_ref[0]                                                # (T, C)
    wq = w_ref[0]                                               # (C, LANE)
    wk = w_ref[1]
    wv = w_ref[2]

    # Three independent MXU pushes (no lane sub-slicing of a fused result).
    q = jnp.dot(x, wq, preferred_element_type=jnp.float32)      # (T, LANE)
    k = jnp.dot(x, wk, preferred_element_type=jnp.float32)      # (T, LANE)
    v = jnp.dot(x, wv, preferred_element_type=x.dtype)          # (T, LANE)

    # Scores: contract q, k on the (zero-padded) head axis; padding adds 0s.
    wei = lax.dot_general(q, k, (((1,), (1,)), ((), ())),
                          preferred_element_type=jnp.float32)   # (T, T)

    # Per-batch (T, T) causal mask: keep iff key position <= query position.
    row = lax.broadcasted_iota(jnp.int32, (T, T), 0)
    col = lax.broadcasted_iota(jnp.int32, (T, T), 1)
    wei = jnp.where(col <= row, wei, -jnp.inf)

    # Softmax in f32 (v5e VPU/EUP have no bf16). Diagonal is always unmasked,
    # so no all--inf rows / NaNs. Exact reciprocal: denom is a single column.
    wei_max = jnp.max(wei, axis=-1, keepdims=True)
    wei_exp = jnp.exp(wei - wei_max)
    denom = jnp.sum(wei_exp, axis=-1, keepdims=True)
    probs = wei_exp * pl.reciprocal(denom, approx=False)

    out = jnp.dot(probs.astype(v.dtype), v,
                  preferred_element_type=jnp.float32)           # (T, LANE)
    o_ref[0] = out.astype(o_ref.dtype)


def make_head_weights(wk, wq, wv, *, dtype=jnp.bfloat16):
    """Pack the (static) Head weights once, off the forward path.

    wk/wq/wv: (C, H) weights of Linear(C, H, bias=False), input-major.
    Returns a (3, C, LANE) array with the C**-0.5 attention scale folded into
    the q slot and the head axis zero-padded to the 128-lane width.
    """
    C, H = wq.shape
    scale = jnp.float32(C) ** jnp.float32(-0.5)
    w = jnp.stack([wq.astype(jnp.float32) * scale,
                   wk.astype(jnp.float32),
                   wv.astype(jnp.float32)], axis=0)             # (3, C, H)
    if H < LANE:
        w = jnp.pad(w, ((0, 0), (0, 0), (0, LANE - H)))
    return w.astype(dtype)


def head_forward(x, w_packed, *, head_size=HEAD_SIZE):
    """Single-head causal self-attention matching PyTorch `Head.forward`.

    x: (B, T, C);  w_packed: (3, C, LANE) from make_head_weights().
    Returns (B, T, head_size) float32.
    """
    B, T, C = x.shape
    assert w_packed.shape == (3, C, LANE)
    xc = x.astype(w_packed.dtype)   # bf16 on the v6e/v7x fast path, else f32

    kernel = functools.partial(head_kernel, T=T)

    flops = B * (3 * 2 * T * C * LANE        # q/k/v projections
                 + 2 * T * LANE * T          # scores
                 + 2 * T * T * LANE)         # probs @ v
    bytes_accessed = (xc.size * xc.dtype.itemsize
                      + w_packed.size * w_packed.dtype.itemsize
                      + B * T * LANE * 4)

    out = pl.pallas_call(
        kernel,
        out_shape=jax.ShapeDtypeStruct((B, T, LANE), jnp.float32),
        grid_spec=pltpu.PrefetchScalarGridSpec(
            num_scalar_prefetch=0,
            grid=(B,),
            in_specs=[
                pl.BlockSpec((1, T, C), lambda b: (b, 0, 0)),
                # Constant weight block: staged into VMEM once, reused every step.
                pl.BlockSpec((3, C, LANE), lambda b: (0, 0, 0)),
            ],
            out_specs=pl.BlockSpec((1, T, LANE), lambda b: (b, 0, 0)),
        ),
        compiler_params=pltpu.CompilerParams(
            dimension_semantics=("parallel",)),
        cost_estimate=pl.CostEstimate(
            flops=flops,
            transcendentals=B * T * (T + 1),
            bytes_accessed=bytes_accessed),
    )(xc, w_packed)
    # Lane-dense (128-wide) stores inside the kernel; slice back to head_size here.
    return out[:, :, :head_size]


def head_reference(x, wk, wq, wv):
    """Pure-JAX f32 reference matching the PyTorch forward (dropout in eval mode)."""
    B, T, C = x.shape
    k = x @ wk
    q = x @ wq
    v = x @ wv
    wei = (q @ jnp.swapaxes(k, -2, -1)) * (C ** -0.5)
    tril = jnp.tril(jnp.ones((T, T), dtype=bool))
    wei = jnp.where(tril, wei, -jnp.inf)
    wei = jax.nn.softmax(wei, axis=-1)
    return wei @ v


if __name__ == "__main__":
    key = jax.random.PRNGKey(0)
    kx, kk, kq, kv = jax.random.split(key, 4)

    B, T, C, H = 2, BLOCK_SIZE, EMBEDDING_DIM, HEAD_SIZE
    x = jax.random.normal(kx, (B, T, C), dtype=jnp.float32)
    # deterministic "Linear(bias=False)" weights, stored as (C, H)
    wk = jax.random.normal(kk, (C, H), dtype=jnp.float32) * (C ** -0.5)
    wq = jax.random.normal(kq, (C, H), dtype=jnp.float32) * (C ** -0.5)
    wv = jax.random.normal(kv, (C, H), dtype=jnp.float32) * (C ** -0.5)

    ref = head_reference(x, wk, wq, wv)

    # f32 path: all-f32 MXU + exact reciprocal -> tight tolerance.
    w_f32 = make_head_weights(wk, wq, wv, dtype=jnp.float32)
    out_f32 = jax.block_until_ready(head_forward(x, w_f32))
    assert out_f32.shape == (B, T, H)
    assert jnp.allclose(out_f32, ref, atol=2e-3, rtol=2e-3), "f32 kernel mismatch"

    # bf16 MXU-operand path (v6e/v7x fast path; softmax stays f32 in-kernel).
    # Looser tolerance reflects only the bf16 quantization of x / weights.
    w_bf16 = make_head_weights(wk, wq, wv, dtype=jnp.bfloat16)
    out_bf16 = jax.block_until_ready(head_forward(x, w_bf16))
    assert out_bf16.shape == (B, T, H)
    assert jnp.allclose(out_bf16, ref, atol=5e-2, rtol=5e-2), "bf16 kernel mismatch"

    print("KERNEL_OK")
</pallas_src>

<mosaic_0001>
module attributes {stable_mosaic.version = 11 : i64} {
  func.func @head_kernel(%arg0: i32, %arg1: memref<1x8x64xf32, #tpu.memory_space<vmem>>, %arg2: memref<3x64x128xf32, #tpu.memory_space<vmem>>, %arg3: memref<1x8x128xf32, #tpu.memory_space<vmem>>) attributes {dimension_semantics = [#tpu.dimension_semantics<parallel>], iteration_bounds = array<i64: 2>, scalar_prefetch = 0 : i64, scratch_operands = 0 : i64, tpu.core_type = #tpu.core_type<tc>, window_params = [{transform_indices = @transform_0, window_bounds = array<i64: 1, 8, 64>}, {pipeline_mode = #tpu.pipeline_mode<synchronous>, transform_indices = @transform_1, window_bounds = array<i64: 3, 64, 128>}, {transform_indices = @transform_2, window_bounds = array<i64: 1, 8, 128>}]} {
    %c0 = arith.constant 0 : index
    %c0_0 = arith.constant 0 : index
    %c0_1 = arith.constant 0 : index
    %0 = vector.load %arg1[%c0, %c0_0, %c0_1] : memref<1x8x64xf32, #tpu.memory_space<vmem>>, vector<1x8x64xf32>
    %1 = vector.shape_cast %0 : vector<1x8x64xf32> to vector<8x64xf32>
    %c0_2 = arith.constant 0 : index
    %c0_3 = arith.constant 0 : index
    %c0_4 = arith.constant 0 : index
    %2 = vector.load %arg2[%c0_2, %c0_3, %c0_4] : memref<3x64x128xf32, #tpu.memory_space<vmem>>, vector<1x64x128xf32>
    %3 = vector.shape_cast %2 : vector<1x64x128xf32> to vector<64x128xf32>
    %c1 = arith.constant 1 : index
    %c0_5 = arith.constant 0 : index
    %c0_6 = arith.constant 0 : index
    %4 = vector.load %arg2[%c1, %c0_5, %c0_6] : memref<3x64x128xf32, #tpu.memory_space<vmem>>, vector<1x64x128xf32>
    %5 = vector.shape_cast %4 : vector<1x64x128xf32> to vector<64x128xf32>
    %c2 = arith.constant 2 : index
    %c0_7 = arith.constant 0 : index
    %c0_8 = arith.constant 0 : index
    %6 = vector.load %arg2[%c2, %c0_7, %c0_8] : memref<3x64x128xf32, #tpu.memory_space<vmem>>, vector<1x64x128xf32>
    %7 = vector.shape_cast %6 : vector<1x64x128xf32> to vector<64x128xf32>
    %cst = arith.constant dense<0.000000e+00> : vector<8x128xf32>
    %8 = tpu.matmul %1, %3, %cst {dimension_numbers = #tpu.dot_dimension_numbers<[1], [0], [0], [1], [0, 0, 1, 1], [], []>} : vector<8x64xf32>, vector<64x128xf32>, vector<8x128xf32> -> vector<8x128xf32>
    %cst_9 = arith.constant dense<0.000000e+00> : vector<8x128xf32>
    %9 = tpu.matmul %1, %5, %cst_9 {dimension_numbers = #tpu.dot_dimension_numbers<[1], [0], [0], [1], [0, 0, 1, 1], [], []>} : vector<8x64xf32>, vector<64x128xf32>, vector<8x128xf32> -> vector<8x128xf32>
    %cst_10 = arith.constant dense<0.000000e+00> : vector<8x128xf32>
    %10 = tpu.matmul %1, %7, %cst_10 {dimension_numbers = #tpu.dot_dimension_numbers<[1], [0], [0], [1], [0, 0, 1, 1], [], []>} : vector<8x64xf32>, vector<64x128xf32>, vector<8x128xf32> -> vector<8x128xf32>
    %cst_11 = arith.constant dense<0.000000e+00> : vector<8x8xf32>
    %11 = tpu.matmul %8, %9, %cst_11 {dimension_numbers = #tpu.dot_dimension_numbers<[1], [1], [0], [0], [0, 0, 1, 0], [], []>} : vector<8x128xf32>, vector<8x128xf32>, vector<8x8xf32> -> vector<8x8xf32>
    %12 = tpu.iota {dimensions = array<i32: 0>} : vector<8x8xi32>
    %13 = tpu.iota {dimensions = array<i32: 1>} : vector<8x8xi32>
    %14 = arith.cmpi sle, %13, %12 : vector<8x8xi32>
    %cst_12 = arith.constant 0xFF800000 : f32
    %15 = vector.broadcast %cst_12 : f32 to vector<8x8xf32>
    %16 = arith.select %14, %11, %15 : vector<8x8xi1>, vector<8x8xf32>
    %cst_13 = arith.constant dense<0xFF800000> : vector<8xf32>
    %17 = vector.multi_reduction <maximumf>, %16, %cst_13 [1] : vector<8x8xf32> to vector<8xf32>
    %18 = vector.shape_cast %17 : vector<8xf32> to vector<8x1xf32>
    %19 = vector.broadcast %18 : vector<8x1xf32> to vector<8x8xf32>
    %20 = arith.subf %16, %19 : vector<8x8xf32>
    %21 = math.exp %20 : vector<8x8xf32>
    %cst_14 = arith.constant dense<0.000000e+00> : vector<8xf32>
    %22 = vector.multi_reduction <add>, %21, %cst_14 [1] : vector<8x8xf32> to vector<8xf32>
    %23 = vector.shape_cast %22 : vector<8xf32> to vector<8x1xf32>
    %24 = tpu.reciprocal %23 : vector<8x1xf32> -> vector<8x1xf32>
    %25 = vector.broadcast %24 : vector<8x1xf32> to vector<8x8xf32>
    %26 = arith.mulf %21, %25 : vector<8x8xf32>
    %cst_15 = arith.constant dense<0.000000e+00> : vector<8x128xf32>
    %27 = tpu.matmul %26, %10, %cst_15 {dimension_numbers = #tpu.dot_dimension_numbers<[1], [0], [0], [1], [0, 0, 1, 1], [], []>} : vector<8x8xf32>, vector<8x128xf32>, vector<8x128xf32> -> vector<8x128xf32>
    %c0_16 = arith.constant 0 : index
    %c0_17 = arith.constant 0 : index
    %c0_18 = arith.constant 0 : index
    %28 = vector.load %arg3[%c0_16, %c0_17, %c0_18] : memref<1x8x128xf32, #tpu.memory_space<vmem>>, vector<1x8x128xf32>
    %29 = vector.shape_cast %28 : vector<1x8x128xf32> to vector<8x128xf32>
    %30 = vector.shape_cast %27 : vector<8x128xf32> to vector<1x8x128xf32>
    tpu.vector_store %arg3[%c0_16, %c0_17, %c0_18], %30 {strides = array<i32>} : memref<1x8x128xf32, #tpu.memory_space<vmem>>, vector<1x8x128xf32>,
    return
  }
  func.func @transform_0(%arg0: i32) -> (i32, i32, i32) {
    %c0_i32 = arith.constant 0 : i32
    %c0_i32_0 = arith.constant 0 : i32
    %c0_i32_1 = arith.constant 0 : i32
    return %arg0, %c0_i32, %c0_i32_0 : i32, i32, i32
  }
  func.func @transform_1(%arg0: i32) -> (i32, i32, i32) {
    %c0_i32 = arith.constant 0 : i32
    %c0_i32_0 = arith.constant 0 : i32
    %c0_i32_1 = arith.constant 0 : i32
    %c0_i32_2 = arith.constant 0 : i32
    return %c0_i32, %c0_i32_0, %c0_i32_1 : i32, i32, i32
  }
  func.func @transform_2(%arg0: i32) -> (i32, i32, i32) {
    %c0_i32 = arith.constant 0 : i32
    %c0_i32_0 = arith.constant 0 : i32
    %c0_i32_1 = arith.constant 0 : i32
    return %arg0, %c0_i32, %c0_i32_0 : i32, i32, i32
  }
}

</mosaic_0001>

<bundles_post_ra>
// kernel: tpu_custom_call.1
= control target key start
LH: loop header
LB: loop body
LE: loop exit
PB: predicated region body
PF: predicated region fallthrough
CT: control target
= control target key end

     0   :  { %7 = vsyncpa [#allocation3], 0  ;;  %s820_s0 = inlined_call_operand.hbm [shape: f32[2,8,64], index: 0, kind: input, shape index: {}]   ;;  %s821_s1 = inlined_call_operand.hbm [shape: f32[3,64,128], index: 1, kind: input, shape index: {}]   ;;  %s822_s2 = inlined_call_operand.hbm [shape: f32[2,8,128], index: 2, kind: output, shape index: {}]  }
   0x1   :  { %9 = vsyncpa [#allocation3 + $0x1], 0 }
   0x2   :  { %10 = vsyncpa [#allocation6], 0 }
   0x3   :  { %11 = vsyncpa [#allocation4], 0 }
   0x4   :  { %13 = vsyncpa [#allocation4 + $0x1], 0  ;;  %s671_s9 = smov 0   ;;  %s673_s10 = smov 0  }
   0x5   :  { %s675_s11 = smov 0   ;;  %s677_s12 = smov 0  }
   0x6 LB: > { %s108_s15 = sshll.u32 %s821_s1, 4  ;;  %s695_s16 = sadd.s32 4294967295, %s651_s12   ;;  %s651_s12 = sphi %s677_s12, %s832_s12   ;;  %s647_s11 = sphi %s675_s11, %s831_s11   ;;  %s643_s10 = sphi %s673_s10, %s830_s10   ;;  %s639_s9 = sphi %s671_s9, %s829_s9   ;;  %s109_s15 = int_to_ptr.hbm [resolvable:$true] %s108_s15 }
   0x7   : > { %p441_p0 = scmp.ge.s32.totalorder %s651_s12, 1  ;;  %p40_p1 = scmp.eq.s32.totalorder %s695_s16, 0 }
   0x8   : > { %p97_p2 = scmp.lt.s32.totalorder %s651_s12, 3  ;;  %s653_s18 = smov [#allocation5]  }
   0x9   : > { %s110_s19 = sshll.u32 %s653_s18, 4  ;;  %s654_s20 = smov 128   ;;  %s111_s19 = int_to_ptr.vmem [resolvable:$true] %s110_s19 }
   0xa   : > { %p700_p3 = pnand %p441_p0, %p97_p2  ;;  %s655_s21 = smov 8  }
   0xb   : > { %s440_s22 = sadd.s32 4294967294, %s651_s12   ;;  %s711_s23 = sadd.s32 1, %s651_s12  }
   0xc   : > { %p466_p4 = pneg %p700_p3  ;;  %s26_s24 = sadd.s32 1, %s647_s11 }
   0xd   : > { %s23_s25 = ssub.s32 %s651_s12, %s711_s23  ;;  %p33_p7 = scmp.ne.s32.totalorder %s647_s11, %s643_s10 }
   0xe   : > { %p467_p6 = pnand %p466_p4, %p40_p1  ;;  %p24_p8 = scmp.eq.s32.totalorder %s23_s25, 0 }
   0xf   : > { %p34_p9 = scmp.eq.s32.totalorder %s651_s12, 0  ;;  %p39_p10 = scmp.ne.s32.totalorder %s643_s10, %s639_s9 }
  0x10   : > { %469 = dma.hbm_to_vmem [thread:$0]  (!%p467_p6), %s109_s15, 3072, %s111_s19, [#allocation6], %s654_s20, %s654_s20, %s655_s21  }
  0x11   : > { %p84_p11 = scmp.eq.s32.totalorder %s695_s16, 1  ;;  %p727_p12 = por %p40_p1, %p39_p10 }
  0x12   : > { %s723_s26 = scalar_select %p24_p8, %s647_s11, %s26_s24  }
  0x13   : > { %p731_p13 = por %p84_p11, %p33_p7  ;;  %p90_p0 = scmp.eq.s32.totalorder %s440_s22, 1 }
  0x14   : > { %p35_p2 = por %p34_p9, %p33_p7  ;;  %s124_s29 = sand.u32 1, %s647_s11  }
  0x15   : > { %p736_p4 = por %p90_p0, %p39_p10  ;;  %p479_p6 = scmp.lt.s32.totalorder %s651_s12, 2 }
  0x16   : > { %s444_s3 = sshll.u32 %s124_s29, 3  ;;  %s445_s4 = sshll.u32 %s651_s12, 3 }
  0x17   : > { %s132_s7 = scalar_lea.hbm %s820_s0, %s445_s4  ;;  %s128_s13 = scalar_lea.vmem [#allocation2], %s444_s3 }
  0x18   : > { %s134_s8 = sshll.u32 %s132_s7, 4  ;;  %s136_s14 = sshll.u32 %s128_s13, 4  ;;  %s135_s8 = int_to_ptr.hbm [resolvable:$true] %s134_s8  ;;  %s137_s14 = int_to_ptr.vmem [resolvable:$true] %s136_s14 }
  0x19   : > { %p745_p8 = pnand %p479_p6, %p35_p2  ;;  %s125_s18 = scalar_lea.sflag [#allocation3], %s124_s29 }
  0x1a   : > { %s551_s19 = sshra.s32 %s135_s8, 4  ;;  %s558_s24 = scalar_lea.hbm %s820_s0, 16  ;;  %s552_s19 = int_to_ptr.hbm [resolvable:$true] %s551_s19 }
  0x1b   : > { %s553_s20 = scalar_lea.hbm %s552_s19, 8  ;;  %p555_p9 = pneg %p745_p8 }
  0x1c   : > { %p554_p7 = scmp.ne.s32.totalorder %s552_s19, %s553_s20  ;;  %p559_p0 = scmp.lt.s32.totalorder %s552_s19, %s820_s0 }
  0x1d   : > { %p560_p2 = scmp.lt.s32.totalorder %s558_s24, %s553_s20 }
  0x1e   : > { %p556_p10 = pnand %p555_p9, %p554_p7 }
  0x1f   : > { %p561_p6 = por %p560_p2, %p559_p0 }
  0x20   : > { %p557_p11 = pneg %p556_p10 }
  0x22   : > { %p562_p5 = pnand %p561_p6, %p557_p11 }
  0x24   : > { %565 = shalt.err (!%p562_p5)
}
  0x25   : > { %473 = dma.hbm_to_vmem [thread:$0]  (!%p745_p8), %s135_s8, 128, %s137_s14, %s125_s18  }
  0x26   : > { %145 = sbr.rel (%p700_p3) target bundleno = 723 (0x2d3), region = 28  ;;  %s762_s29 = sand.u32 (!%p700_p3), 1, %s643_s10  }
  0x27   : > { %s447_s4 = sshll.u32 (!%p700_p3), %s762_s29, 3  ;;  %s148_s5 = scalar_lea.sflag (!%p700_p3), [#allocation3], %s762_s29 }
  0x28   : > { %s768_s6 = scalar_lea.vmem (!%p700_p3), [#allocation2], %s447_s4 }
  0x2b   : > { %626 = dma.done.wait (%p727_p12), %s148_s5, 128  }
  0x2c   : > { %628 = vsyncadd (%p727_p12), %s148_s5, 4294967168 }
  0x2d   : > { %630 = dma.done.wait (%p40_p1), [#allocation6], 3072  }
  0x2e   : > { %632 = vsyncadd (%p40_p1), [#allocation6], 4294964224  ;;  %v195_v0 = vld [vmem:[#allocation5 + $0x78] sm:$0xff]  ;;  %v194_v1 = vld [vmem:[#allocation5 + $0x70] sm:$0xff]  ;;  %vm205_vm0 = vcmask 523264   ;;  %v289_v23 = vlaneseq  ;;  %vm295_vm2 = vcmask 64512  }
  0x2f   : > { %v186_v2 = vld [vmem:[#allocation5 + $0x38] sm:$0xff]  ;;  %237 = vmatpush.msra.mxu1 %v195_v0  ;;  %v185_v3 = vld [vmem:[#allocation5 + $0x30] sm:$0xff]  ;;  %v193_v4 = vld [vmem:[#allocation5 + $0x68] sm:$0xff]  ;;  %s455_s17 = sshll.u32 %s695_s16, 3  ;;  %s177_s13 = scalar_lea.vmem [#allocation7], %s447_s4 }
  0x30   : > { %217 = vmatpush.msra.mxu0 %v186_v2  ;;  %v184_v5 = vld [vmem:[#allocation5 + $0x28] sm:$0xff]  ;;  %v192_v6 = vld [vmem:[#allocation5 + $0x60] sm:$0xff]  ;;  %v191_v8 = vld [vmem:[#allocation5 + $0x58] sm:$0xff]  ;;  %v290_v24 = vshrl.u32 %v289_v23, 7  ;;  %v292_v25 = vand.u32 127, %v289_v23  ;;  %s355_s8 = scalar_lea.hbm %s822_s2, %s455_s17  ;;  %s357_s14 = sshll.u32 %s177_s13, 4  ;;  %s358_s14 = int_to_ptr.vmem [resolvable:$true] %s357_s14 }
  0x31   : > { %238 = vmatpush.msra.mxu1 %v194_v1  ;;  %v183_v7 = vld [vmem:[#allocation5 + $0x20] sm:$0xff]  ;;  %v182_v9 = vld [vmem:[#allocation5 + $0x18] sm:$0xff]  ;;  %v190_v10 = vld [vmem:[#allocation5 + $0x50] sm:$0xff]  ;;  %s359_s15 = sshll.u32 %s355_s8, 4  ;;  %s345_s18 = scalar_lea.sflag [#allocation4], %s762_s29  ;;  %s360_s15 = int_to_ptr.hbm [resolvable:$true] %s359_s15 }
  0x32   : > { %218 = vmatpush.msra.mxu0 %v185_v3  ;;  %v181_v11 = vld [vmem:[#allocation5 + $0x10] sm:$0xff]  ;;  %v189_v12 = vld [vmem:[#allocation5 + $0x48] sm:$0xff]  ;;  %v188_v14 = vld [vmem:[#allocation5 + $0x40] sm:$0xff]  ;;  %vm293_vm1 = vcmp.le.s32.totalorder %v292_v25, %v290_v24  ;;  %s595_s19 = sshra.s32 %s360_s15, 4  ;;  %s601_s22 = scalar_lea.hbm %s822_s2, 16  ;;  %s596_s19 = int_to_ptr.hbm [resolvable:$true] %s595_s19 }
  0x33   : > { %239 = vmatpush.msra.mxu1 %v193_v4  ;;  %v180_v13 = vld [vmem:[#allocation5 + $0x8] sm:$0xff]  ;;  %v179_v15 = vld [vmem:[#allocation5] sm:$0xff]  ;;  %v178_v16 = vld [vmem:[%s768_s6] sm:$0xff]  ;;  %s597_s20 = scalar_lea.hbm %s596_s19, 8  ;;  %p602_p12 = scmp.lt.s32.totalorder %s596_s19, %s822_s2 }
  0x34   : > { %219 = vmatpush.msra.mxu0 %v184_v5  ;;  %v204_v19 = vld [vmem:[#allocation5 + $0xb8] sm:$0xff]  ;;  %v203_v20 = vld [vmem:[#allocation5 + $0xb0] sm:$0xff]  ;;  %v202_v21 = vld [vmem:[#allocation5 + $0xa8] sm:$0xff]  ;;  %p598_p1 = scmp.ne.s32.totalorder %s596_s19, %s597_s20  ;;  %p603_p8 = scmp.lt.s32.totalorder %s601_s22, %s597_s20 }
  0x35   : > { %240 = vmatpush.msra.mxu1 %v192_v6  ;;  %257 = vmatpush.msra.mxu2 %v204_v19  ;;  %v201_v22 = vld [vmem:[#allocation5 + $0xa0] sm:$0xff]  ;;  %v200_v29 = vld [vmem:[#allocation5 + $0x98] sm:$0xff]  ;;  %v199_v30 = vld [vmem:[#allocation5 + $0x90] sm:$0xff] }
  0x36   : > { %220 = vmatpush.msra.mxu0 %v183_v7  ;;  %v198_v31 = vld [vmem:[#allocation5 + $0x88] sm:$0xff]  ;;  %v197_v32 = vld [vmem:[#allocation5 + $0x80] sm:$0xff]  ;;  %p599_p3 = pnand %p598_p1, %p731_p13  ;;  %p604_p7 = por %p603_p8, %p602_p12 }
  0x37   : > { %241 = vmatpush.msra.mxu1 %v191_v8  ;;  %258 = vmatpush.msra.mxu2 %v203_v20 }
  0x38   : > { %221 = vmatpush.msra.mxu0 %v182_v9  ;;  %p600_p5 = pneg %p599_p3 }
  0x39   : > { %242 = vmatpush.msra.mxu1 %v190_v10  ;;  %259 = vmatpush.msra.mxu2 %v202_v21 }
  0x3a   : > { %222 = vmatpush.msra.mxu0 %v181_v11  ;;  %p605_p9 = pnand %p604_p7, %p600_p5 }
  0x3b   : > { %243 = vmatpush.msra.mxu1 %v189_v12  ;;  %260 = vmatpush.msra.mxu2 %v201_v22 }
  0x3c   : > { %223 = vmatpush.msra.mxu0 %v180_v13 }
  0x3d   : > { %244 = vmatpush.msra.mxu1 %v188_v14  ;;  %261 = vmatpush.msra.mxu2 %v200_v29 }
  0x3e   : > { %224 = vmatpush.msra.mxu0 %v179_v15  ;;  %451 = vmatmul.msk.f32.vlgmr.msra.gmra.mxu1 %vm205_vm0, %v178_v16 }
  0x3f   : > { %450 = vmatmul.msk.f32.vlgmr.msra.gmra.mxu0 %vm205_vm0, %v178_v16  ;;  %262 = vmatpush.msra.mxu2 %v199_v30 }
  0x41   : > { %263 = vmatpush.msra.mxu2 %v198_v31 }
  0x43   : > { %264 = vmatpush.msra.mxu2 %v197_v32 }
  0x44   : > { %452 = vmatmul.msk.f32.vlgmr.msra.gmra.mxu2 %vm205_vm0, %v178_v16 }
  0xbb   : > { %v246_v17 = vpop.f32.mrf.mxu1 }
  0xbc   : > { %284 = vmatpush.xpose.msra.mxu3 %v246_v17  ;;  %v226_v18 = vpop.f32.mrf.mxu0 }
  0xbf   : > { %285 = vmatmul.f32.vlgmr.msra.gmra.mxu3 %v226_v18 }
  0xc7   : > { %v266_v38 = vpop.f32.mrf.mxu2 }
  0xc8   : > { %338 = vmatpush.msrb.mxu3 %v266_v38 }
 0x142   : > { %v286_v26 = vpop.f32.mrf.mxu3 }
 0x143   : > { %v294_v27 = vsel %vm293_vm1, %v286_v26, -inf }
 0x144   : > { %v296_v28 = vsel %vm295_vm2, %v294_v27, -inf }
 0x145   : > { %297 = vmax.xlane.f32.xlu0 %v296_v28 }
 0x1b8   : > { %v298_v33 = vpop.xlane.xlu0 %297 }
 0x1b9   : > { %v299_v34 = vsub.f32 %v294_v27, %v298_v33 }
 0x1bb   : > { %v300_v35 = vmul.f32 1.442695, %v299_v34 }
 0x1bd   : > { %517 = vpow2.f32 %v300_v35 }
 0x1c3   : > { %v518_v36 = vpop.eup %517 }
 0x1c4   : > { %v302_v37 = vsel %vm295_vm2, %v518_v36, 0.0 }
 0x1c5   : > { %303 = vadd.xlane.f32.xlu0 %v302_v37 }
 0x238   : > { %v304_v39 = vpop.xlane.xlu0 %303 }
 0x239   : > { %519 = vrcp.f32 %v304_v39  ;;  %v316_v43 = vand.u32 2147483648, %v304_v39  ;;  %v314_v45 = vand.u32 2147483647, %v304_v39  ;;  %vm310_vm4 = vweird.f32 %v304_v39 }
 0x23b   : > { %v317_v47 = vor.u32 1.1754944e-38, %v316_v43  ;;  %vm315_vm6 = vcmp.eq.f32.partialorder %v314_v45, 8.507059e+37 }
 0x23f   : > { %v520_v40 = vpop.eup %519 }
 0x240   : > { %v306_v41 = vmul.f32 %v520_v40, %v304_v39  ;;  %vm311_vm3 = vweird.f32 %v520_v40 }
 0x241   : > { %vm312_vm5 = vmor %vm310_vm4, %vm311_vm3 }
 0x242   : > { %v307_v42 = vsub.f32 1.0, %v306_v41 }
 0x244   : > { %v308_v44 = vmul.f32 %v520_v40, %v307_v42 }
 0x246   : > { %v309_v46 = vadd.f32 %v520_v40, %v308_v44 }
 0x248   : > { %v313_v48 = vsel %vm312_vm5, %v520_v40, %v309_v46 }
 0x249   : > { %v318_v49 = vsel %vm315_vm6, %v317_v47, %v313_v48 }
 0x24a   : > { %v319_v50 = vmul.f32 %v518_v36, %v318_v49 }
 0x24c   : > { %453 = vmatmul.msk.f32.vlgmr.msrb.gmra.mxu3 %vm295_vm2, %v319_v50 }
 0x2cf   : > { %v340_v51 = vpop.f32.mrf.mxu3 }
 0x2d0   : > { %343 = vst [vmem:[%s177_s13] sm:$0xff] %v340_v51 }
 0x2d1   : > { %608 = shalt.err (!%p605_p9)
}
 0x2d2   : > { %464 = dma.vmem_to_hbm [thread:$0]  (%p731_p13), %s358_s14, 128, %s360_s15, %s345_s18  }
 0x2d3 PF: > { %s371_s3 = sand.u32 1, %s639_s9   ;;  %p828_p10 = scmp.ge.s32.totalorder %s651_s12, 2 }
 0x2d4   : > { %s372_s29 = scalar_lea.sflag [#allocation4], %s371_s3 }
 0x2d5   : > { %p475_p11 = pnand %p828_p10, %p736_p4 }
 0x2d7   : > { %p476_p0 = pneg %p475_p11 }
 0x2d9   : > { %634 = dma.done.wait (%p476_p0), %s372_s29, 128  }
 0x2da   : > { %636 = vsyncadd (%p476_p0), %s372_s29, 4294967168  ;;  %p16_p2 = scmp.ge.s32.totalorder %s711_s23, 4   ;;  %s829_s9 = smov %s643_s10 }
 0x2db   : > { %s830_s10 = smov %s647_s11  ;;  %s831_s11 = smov %s723_s26 }
 0x2dc   : > { %s832_s12 = smov %s711_s23  ;;  %18 = sbr.rel (!%p16_p2) target bundleno = 6 (0x6), region = 79 }
 0x2e1   :  { %378 = vsyncpa [#allocation3], 1 }
 0x2e2   :  { %380 = vsyncpa [#allocation3 + $0x1], 1 }
 0x2e3   :  { %381 = vsyncpa [#allocation6], 1 }
 0x2e4   :  { %382 = vsyncpa [#allocation4], 1 }
 0x2e5   :  { %384 = vsyncpa [#allocation4 + $0x1], 1 }

</bundles_post_ra>
